<compile_context>
chip_gen: v7x
topology: tpu7x:2x2x1
jax: 0.10.0
libtpu: 0.0.40
codegen_flags: <defaults>
</compile_context>

<pallas_src>
import math

import jax
import jax.numpy as jnp
from jax.experimental import pallas as pl
from jax.experimental.pallas import tpu as pltpu

_LANE = 128        # vreg lane width (last dim)
_SUBLANE = 8       # vreg sublanes for f32 (second-to-last dim)
_MAX_ROW_TILE = 8192


def _round_up(x, m):
    return ((x + m - 1) // m) * m


def _vmem_capacity_bytes():
    """Per-core VMEM capacity; conservative fallback = 64 MiB (v7x per-TC)."""
    try:
        info = pltpu.get_tpu_info()
        for attr in ("vmem_capacity_bytes", "vmem_size_bytes", "vmem_bytes"):
            v = getattr(info, attr, None)
            if isinstance(v, int) and v > 0:
                return v
    except Exception:
        pass
    return 64 << 20


# --------------------------------- kernels ----------------------------------

def _linear_kernel(x_ref, w_ref, b_ref, o_ref):
    # MXU matmul with f32 accumulation; bias add on the VPU; cast on store.
    acc = jnp.dot(x_ref[...], w_ref[...], preferred_element_type=jnp.float32)
    o_ref[...] = (acc + b_ref[...]).astype(o_ref.dtype)


def _linear_kernel_ktiled(x_ref, w_ref, b_ref, o_ref, acc_ref):
    # Reduction over the K grid axis with an f32 accumulator in VMEM scratch.
    @pl.when(pl.program_id(1) == 0)
    def _():
        acc_ref[...] = jnp.zeros_like(acc_ref)

    acc_ref[...] += jnp.dot(x_ref[...], w_ref[...],
                            preferred_element_type=jnp.float32)

    @pl.when(pl.program_id(1) == pl.num_programs(1) - 1)
    def _():
        o_ref[...] = (acc_ref[...] + b_ref[...]).astype(o_ref.dtype)


# ------------------------------ tile selection -------------------------------

def _pick_batch_tile(d_in, n_use, in_isz, out_isz, w_isz, budget, row_align):
    # Resident (single-buffered) W + bias; double-buffered x and out tiles.
    fixed = d_in * n_use * w_isz + 2 * n_use * 4
    per_row = 2 * (d_in * in_isz + n_use * out_isz)
    tb = (budget - fixed) // max(per_row, 1)
    tb = (tb // row_align) * row_align
    return int(max(row_align, min(_MAX_ROW_TILE, tb)))


def _pick_k_tile(d_in, n_use, w_isz, budget):
    d_in_128 = _round_up(d_in, _LANE)
    for cand in (2048, 1024, 512, 256):
        if cand <= d_in_128 and 2 * cand * n_use * w_isz <= budget // 2:
            return cand
    return _LANE


# -------------------------------- call paths ---------------------------------

def _mtiled_call(x2, w_p, b_p, out_dtype, m, d_in, n_use, tb, vmem_limit,
                 single_buffer_w):
    wb_kwargs = dict(pipeline_mode=pl.Buffered(1)) if single_buffer_w else {}
    # TODO(synk): confirm in a profile that the "parallel" batch axis engages
    # both TensorCores on v7x; otherwise switch to an explicit core split (P9).
    return pl.pallas_call(
        _linear_kernel,
        out_shape=jax.ShapeDtypeStruct((m, n_use), out_dtype),
        grid=(pl.cdiv(m, tb),),
        in_specs=[
            pl.BlockSpec((tb, d_in), lambda i: (i, 0)),
            pl.BlockSpec((d_in, n_use), lambda i: (0, 0), **wb_kwargs),
            pl.BlockSpec((1, n_use), lambda i: (0, 0), **wb_kwargs),
        ],
        out_specs=pl.BlockSpec((tb, n_use), lambda i: (i, 0)),
        compiler_params=pltpu.CompilerParams(
            dimension_semantics=("parallel",),
            vmem_limit_bytes=vmem_limit,
        ),
    )(x2, w_p, b_p)


def _ktiled_call(x2, w_p, b_p, out_dtype, m, d_in, n_use, in_isz, out_isz,
                 w_isz, budget, vmem_limit, row_align):
    tk = _pick_k_tile(d_in, n_use, w_isz, budget)
    d_in_p = _round_up(d_in, tk)
    if d_in_p != d_in:
        # Zero-padding the contraction dim is numerically exact; only taken on
        # the rare huge-D_in fallback path.
        x2 = jnp.pad(x2, ((0, 0), (0, d_in_p - d_in)))
        w_p = jnp.pad(w_p, ((0, d_in_p - d_in), (0, 0)))

    per_row = 2 * (tk * in_isz + n_use * out_isz) + n_use * 4   # + acc scratch
    fixed = 2 * tk * n_use * w_isz + 2 * n_use * 4
    tb = (budget - fixed) // max(per_row, 1)
    tb = (tb // row_align) * row_align
    tb = int(max(row_align, min(_MAX_ROW_TILE, tb)))

    return pl.pallas_call(
        _linear_kernel_ktiled,
        out_shape=jax.ShapeDtypeStruct((m, n_use), out_dtype),
        grid=(pl.cdiv(m, tb), d_in_p // tk),
        in_specs=[
            pl.BlockSpec((tb, tk), lambda i, k: (i, k)),
            pl.BlockSpec((tk, n_use), lambda i, k: (k, 0)),
            pl.BlockSpec((1, n_use), lambda i, k: (0, 0)),
        ],
        out_specs=pl.BlockSpec((tb, n_use), lambda i, k: (i, 0)),
        scratch_shapes=[pltpu.VMEM((tb, n_use), jnp.float32)],
        compiler_params=pltpu.CompilerParams(
            dimension_semantics=("parallel", "arbitrary"),
            vmem_limit_bytes=vmem_limit,
        ),
    )(x2, w_p, b_p)


# --------------------------------- wrapper -----------------------------------

def regression_head(x, w, b, *, vmem_budget_bytes=None):
    """y = x @ w + b via Pallas TPU kernels.

    x: (..., D_in); w: (D_in, D_out); b: (D_out,). Returns (..., D_out).
    `vmem_budget_bytes` optionally overrides the working-set budget (testing).
    """
    lead = x.shape[:-1]
    d_in = x.shape[-1]
    d_out = w.shape[-1]
    out_dtype = x.dtype
    m = math.prod(lead) if lead else 1
    x2 = x.reshape(m, d_in)

    cap = _vmem_capacity_bytes()
    budget = (int(vmem_budget_bytes) if vmem_budget_bytes is not None
              else max(16 << 20, int(cap * 0.45)))
    vmem_limit = int(max(32 << 20, min(int(cap * 0.75), cap - (4 << 20))))

    in_isz = jnp.dtype(x2.dtype).itemsize
    w_isz = jnp.dtype(w.dtype).itemsize
    out_isz = jnp.dtype(out_dtype).itemsize
    row_align = 16 if in_isz == 2 else _SUBLANE  # bf16 packs 16 sublanes/vreg

    # Output lane handling: pad D_out to a 128 multiple only when the extra
    # writeback is <= 2x; tiny D_out stays exact (masked stores, 1x HBM bytes,
    # and the post-slice becomes a no-op).
    n_pad = _round_up(d_out, _LANE)
    pad_out = (n_pad != d_out) and (n_pad <= 2 * d_out)
    n_use = n_pad if pad_out else d_out

    # TODO(synk): if this head is called every step, hoist this pad/cast of W, b
    # to parameter-setup time so it is not re-materialized per call.
    w_p = jnp.pad(w, ((0, 0), (0, n_use - d_out))) if n_use != d_out else w
    b_p = jnp.pad(b, (0, n_use - d_out)) if n_use != d_out else b
    b_p = b_p.reshape(1, n_use).astype(jnp.float32)

    w_bytes = d_in * n_use * w_isz
    single_block = m * d_in * in_isz + m * n_use * out_isz + w_bytes + 8 * n_use

    if single_block <= budget:
        # Whole problem in one VMEM-resident block: no grid, no pipeline.
        out_p = pl.pallas_call(
            _linear_kernel,
            out_shape=jax.ShapeDtypeStruct((m, n_use), out_dtype),
            in_specs=[
                pl.BlockSpec(memory_space=pltpu.MemorySpace.VMEM),
                pl.BlockSpec(memory_space=pltpu.MemorySpace.VMEM),
                pl.BlockSpec(memory_space=pltpu.MemorySpace.VMEM),
            ],
            out_specs=pl.BlockSpec(memory_space=pltpu.MemorySpace.VMEM),
            compiler_params=pltpu.CompilerParams(vmem_limit_bytes=vmem_limit),
        )(x2, w_p, b_p)
    elif w_bytes > budget // 4:
        # Resident W would crush the batch tile (or overflow VMEM): tile over K.
        out_p = _ktiled_call(x2, w_p, b_p, out_dtype, m, d_in, n_use, in_isz,
                             out_isz, w_isz, budget, vmem_limit, row_align)
    else:
        # Tile only over the flattened batch; W/b stay VMEM-resident
        # (single-buffered) across the loop. No M padding: partial trailing
        # block is handled by the pipeline.
        tb = _pick_batch_tile(d_in, n_use, in_isz, out_isz, w_isz, budget,
                              row_align)
        try:
            out_p = _mtiled_call(x2, w_p, b_p, out_dtype, m, d_in, n_use, tb,
                                 vmem_limit, single_buffer_w=True)
        except Exception:
            # Fallback if single-buffered resident blocks are rejected.
            out_p = _mtiled_call(x2, w_p, b_p, out_dtype, m, d_in, n_use, tb,
                                 vmem_limit, single_buffer_w=False)

    y = out_p[:, :d_out] if n_use != d_out else out_p
    return y.reshape(*lead, d_out)


# ----------------------------------- test ------------------------------------

if __name__ == "__main__":
    key = jax.random.PRNGKey(0)
    kx, kw, kb, kx2, kx3, kw3, kb3 = jax.random.split(key, 7)

    # Shapes consistent with the module: x (batch=2, seq=4, input_dim=32),
    # Linear(32 -> 16). Leading dims are flattened inside the wrapper.
    D_in, D_out = 32, 16
    x = jax.random.normal(kx, (2, 4, D_in), dtype=jnp.float32)
    bound = 1.0 / math.sqrt(D_in)
    w = jax.random.uniform(kw, (D_in, D_out), minval=-bound, maxval=bound,
                           dtype=jnp.float32)
    b = jax.random.uniform(kb, (D_out,), minval=-bound, maxval=bound,
                           dtype=jnp.float32)

    # 1) Small path (single VMEM block, no grid).
    y = regression_head(x, w, b)
    jax.block_until_ready(y)
    y_ref = x @ w + b
    assert y.shape == (2, 4, D_out)
    assert jnp.allclose(y, y_ref, atol=1e-5, rtol=1e-5), "small-path mismatch"

    # 2) M-tiled path (forced via a tiny VMEM budget): grid over the batch with
    #    a partial trailing block, resident single-buffered W/b, no M padding.
    x_big = jax.random.normal(kx2, (1300, D_in), dtype=jnp.float32)
    y_big = regression_head(x_big, w, b, vmem_budget_bytes=128 << 10)
    jax.block_until_ready(y_big)
    y_big_ref = x_big @ w + b
    assert y_big.shape == (1300, D_out)
    assert jnp.allclose(y_big, y_big_ref, atol=1e-5, rtol=1e-5), \
        "M-tiled-path mismatch"

    # 3) K-tiled fallback (forced via a tiny VMEM budget): accumulator scratch,
    #    init/finalize via pl.when over the reduction axis.
    Dk_in, Dk_out = 512, 128
    xk = jax.random.normal(kx3, (200, Dk_in), dtype=jnp.float32)
    bk_bound = 1.0 / math.sqrt(Dk_in)
    wk = jax.random.uniform(kw3, (Dk_in, Dk_out), minval=-bk_bound,
                            maxval=bk_bound, dtype=jnp.float32)
    bk = jax.random.uniform(kb3, (Dk_out,), minval=-bk_bound, maxval=bk_bound,
                            dtype=jnp.float32)
    yk = regression_head(xk, wk, bk, vmem_budget_bytes=256 << 10)
    jax.block_until_ready(yk)
    yk_ref = xk @ wk + bk
    assert yk.shape == (200, Dk_out)
    assert jnp.allclose(yk, yk_ref, atol=1e-2, rtol=1e-2), "K-tiled-path mismatch"

    print("KERNEL_OK")
</pallas_src>

<mosaic_0001>
module attributes {stable_mosaic.version = 11 : i64} {
  func.func @_linear_kernel(%arg0: memref<8x32xf32, #tpu.memory_space<vmem>>, %arg1: memref<32x16xf32, #tpu.memory_space<vmem>>, %arg2: memref<1x16xf32, #tpu.memory_space<vmem>>, %arg3: memref<8x16xf32, #tpu.memory_space<vmem>>) attributes {dimension_semantics = [], scalar_prefetch = 0 : i64, scratch_operands = 0 : i64, tpu.core_type = #tpu.core_type<tc>} {
    %c0 = arith.constant 0 : index
    %c0_0 = arith.constant 0 : index
    %0 = vector.load %arg0[%c0, %c0_0] : memref<8x32xf32, #tpu.memory_space<vmem>>, vector<8x32xf32>
    %c0_1 = arith.constant 0 : index
    %c0_2 = arith.constant 0 : index
    %1 = vector.load %arg1[%c0_1, %c0_2] : memref<32x16xf32, #tpu.memory_space<vmem>>, vector<32x16xf32>
    %cst = arith.constant dense<0.000000e+00> : vector<8x16xf32>
    %2 = tpu.matmul %0, %1, %cst {dimension_numbers = #tpu.dot_dimension_numbers<[1], [0], [0], [1], [0, 0, 1, 1], [], []>} : vector<8x32xf32>, vector<32x16xf32>, vector<8x16xf32> -> vector<8x16xf32>
    %c0_3 = arith.constant 0 : index
    %c0_4 = arith.constant 0 : index
    %3 = vector.load %arg2[%c0_3, %c0_4] : memref<1x16xf32, #tpu.memory_space<vmem>>, vector<1x16xf32>
    %4 = vector.broadcast %3 : vector<1x16xf32> to vector<8x16xf32>
    %5 = arith.addf %2, %4 : vector<8x16xf32>
    %c0_5 = arith.constant 0 : index
    %c0_6 = arith.constant 0 : index
    %6 = vector.load %arg3[%c0_5, %c0_6] : memref<8x16xf32, #tpu.memory_space<vmem>>, vector<8x16xf32>
    tpu.vector_store %arg3[%c0_5, %c0_6], %5 {strides = array<i32>} : memref<8x16xf32, #tpu.memory_space<vmem>>, vector<8x16xf32>,
    return
  }
}

</mosaic_0001>

<bundles_post_ra>
// kernel: tpu_custom_call.1
= control target key start
LH: loop header
LB: loop body
LE: loop exit
PB: predicated region body
PF: predicated region fallthrough
CT: control target
= control target key end

     0   :  { %v169_v3 = vmov 0.0|0.0   ;;  %vm170_vm0 = vmmov 0   ;;  %v171_v6 = vmov 0.0   ;;  %s223_s0 = inlined_call_operand.vmem [shape: f32[8,32], index: 0, kind: input, shape index: {}]   ;;  %s224_s1 = inlined_call_operand.vmem [shape: f32[32,16], index: 1, kind: input, shape index: {}]   ;;  %s225_s2 = inlined_call_operand.vmem [shape: f32[1,16], index: 2, kind: input, shape index: {}]   ;;  %s226_s3 = inlined_call_operand.hbm [shape: f32[8,16], index: 3, kind: output, shape index: {}]  }
   0x1   :  { %v16_v0 = vld [vmem:[%s224_s1] sm:$0xff]  ;;  %v17_v1 = vld [vmem:[%s224_s1 + $0x8] sm:$0xff]  ;;  %v18_v2 = vld [vmem:[%s224_s1 + $0x10] sm:$0xff]  ;;  %135 = vmatprep.subr.bf16.mxu0 %v169_v3  ;;  %132 = vmatprep.mubr.msk.f32.mxu0 %vm170_vm0, %v171_v6 }
   0x2   :  { %v136_v4 = vpack.c.bf16 %v17_v1, %v16_v0  ;;  %v19_v5 = vld [vmem:[%s224_s1 + $0x18] sm:$0xff] }
   0x3   :  { %8 = vsyncpa [#allocation3], 0  ;;  %v139_v7 = vpack.c.bf16 %v19_v5, %v18_v2  ;;  %v15_v8 = vld [vmem:[%s223_s0] sm:$0xff]  ;;  %vm27_vm1 = vcmask 261120   ;;  %s172_s24 = smov [#allocation2]   ;;  %vm101_vm2 = vcmask 130048  }
   0x4   :  { %137 = vmatpush3.bf16.msra.mxu0 %v136_v4  ;;  %v117_v9 = vld [vmem:[%s225_s2] ss:$0 sm:$0xff]  ;;  %s109_s1 = sshll.u32 %s172_s24, 4  ;;  %s110_s1 = int_to_ptr.vmem [resolvable:$true] %s109_s1 }
   0x5   :  { %138 = vmatprep.subr.bf16.mxu0 %v169_v3  ;;  %s145_s25 = scalar_lea.vmem %s110_s1, 128  ;;  %p150_p1 = scmp.lt.s32.totalorder %s110_s1, %s110_s1 }
   0x6   :  { %p146_p0 = scmp.ne.s32.totalorder %s110_s1, %s145_s25  ;;  %p151_p2 = scmp.lt.s32.totalorder %s145_s25, %s145_s25 }
   0x8   :  { %140 = vmatpush3.bf16.msra.mxu0 %v139_v7  ;;  %p152_p3 = por %p151_p2, %p150_p1 }
   0xa   :  { %p153_p4 = pnand %p152_p3, %p146_p0 }
   0xb   :  { %133 = vmatmul.mubr.msk.f32.vlgmr.msra.gmra.mrb[0].mxu0 %vm27_vm1, %v15_v8 }
  0xde   :  { %v97_v10 = vpop.f32.mrb[0].mxu0 }
  0xdf   :  { %v98_v11 = vadd.f32 %v117_v9, %v97_v10  ;;  %v134_v12 = vpop.f32.mrb[1].mxu0 }
  0xe1   :  { %102 = vst.msk [vmem:[#allocation2] sm:$0xff] %vm101_vm2, %v98_v11 }
  0xe2   :  { %156 = shalt.err (!%p153_p4)
}
  0xe3   :  { %s157_s27 = scalar_lea.hbm %s226_s3, 128 }
  0xe4   :  { %p158_p5 = scmp.ne.s32.totalorder %s226_s3, %s157_s27  ;;  %p161_p6 = scmp.lt.u32.totalorder %s157_s27, %s226_s3 }
  0xe6   :  { %p163_p7 = pnand %p161_p6, %p158_p5 }
  0xe8   :  { %166 = shalt.err (!%p163_p7)
}
  0xe9   :  { %112 = dma.vmem_to_hbm [thread:$0]  %s110_s1, 128, %s226_s3, [#allocation3]  }
  0xea   :  { %167 = dma.done.wait [#allocation3], 128  }
  0xeb   :  { %168 = vsyncadd [#allocation3], 4294967168 }
  0xec   :  { %116 = vsyncpa [#allocation3], 1 }

</bundles_post_ra>
